<compile_context>
chip_gen: v7x
topology: tpu7x:2x2x1
jax: 0.10.0
libtpu: 0.0.40
codegen_flags: <defaults>
</compile_context>

<pallas_src>
import functools

import jax
import jax.numpy as jnp
from jax.experimental import pallas as pl
from jax.experimental.pallas import tpu as pltpu


def _round_up(x, m):
    return (x + m - 1) // m * m


def _gmu_kernel(xh_ref, xg_ref, xz_ref, xf_ref,
                wh_ref, wg_ref, wz_ref, wf_ref,
                bt_ref, bg_ref,
                fused_ref, gates_ref, *, out_pad):
    # x*_ref   : [TB, d_m]           f32   streamed batch tiles (cast to bf16 here)
    # w*_ref   : [d_m, out_pad+128]  bf16  cols [0:out)=transform, [out_pad:out_pad+4)=gate
    # bt_ref   : [4, out_pad]        f32   transform biases (row per modality, pad cols 0)
    # bg_ref   : [1, 4]              f32   gate bias
    # fused_ref: [TB, out_pad]       bf16  lane-dense fused output slab
    # gates_ref: [TB, 4]             f32   softmax gates
    def mm(x_ref, w_ref):
        return jnp.dot(x_ref[...].astype(jnp.bfloat16), w_ref[...],
                       preferred_element_type=jnp.float32)

    y_h = mm(xh_ref, wh_ref)
    y_g = mm(xg_ref, wg_ref)
    y_z = mm(xz_ref, wz_ref)
    y_f = mm(xf_ref, wf_ref)

    bt = bt_ref[...]
    # Lane-aligned slices of the f32 accumulators (out_pad is a multiple of 128).
    h_h = jnp.tanh(y_h[:, :out_pad] + bt[0:1, :])
    h_g = jnp.tanh(y_g[:, :out_pad] + bt[1:2, :])
    h_z = jnp.tanh(y_z[:, :out_pad] + bt[2:3, :])
    h_f = jnp.tanh(y_f[:, :out_pad] + bt[3:4, :])
    # TODO(synk): train-mode dropout on h_* and the fused sum not implemented (eval mode).

    logits = (y_h[:, out_pad:out_pad + 4] + y_g[:, out_pad:out_pad + 4]
              + y_z[:, out_pad:out_pad + 4] + y_f[:, out_pad:out_pad + 4]
              + bg_ref[...])                                  # [TB, 4] f32
    m = jnp.max(logits, axis=-1, keepdims=True)
    e = jnp.exp(logits - m)
    gates = e * pl.reciprocal(jnp.sum(e, axis=-1, keepdims=True), approx=True)

    fused = (gates[:, 0:1] * h_h + gates[:, 1:2] * h_g
             + gates[:, 2:3] * h_z + gates[:, 3:4] * h_f)

    # Single full-tile, lane-dense stores (no zero-fill / masked partial-column stores).
    fused_ref[...] = fused.astype(fused_ref.dtype)
    gates_ref[...] = gates.astype(gates_ref.dtype)


def pack_params(p):
    """Per-modality packed weights (transform + gate columns, lane-aligned).

    Returns (Ws, bt, bg, out_dim, out_pad):
      Ws : list of 4 arrays [d_m, out_pad+128] bf16
           cols [0:out_dim) = transform weights, [out_pad:out_pad+4) = gate weights
      bt : [4, out_pad] f32 transform biases (row per modality, padded cols zero)
      bg : [1, 4] f32 gate bias
    """
    names = ("h", "g", "z", "f")
    out_dim = p["W_h"].shape[1]
    out_pad = _round_up(out_dim, 128)
    ncols = out_pad + 128

    Ws = []
    for n in names:
        W, Wg = p[f"W_{n}"], p[f"Wgate_{n}"]
        d = W.shape[0]
        Wp = jnp.zeros((d, ncols), jnp.float32)
        Wp = Wp.at[:, :out_dim].set(W)
        Wp = Wp.at[:, out_pad:out_pad + 4].set(Wg)
        Ws.append(Wp.astype(jnp.bfloat16))

    bt = jnp.zeros((4, out_pad), jnp.float32)
    for i, n in enumerate(names):
        bt = bt.at[i, :out_dim].set(p[f"b_{n}"][0])
    bg = p["b_gate"].astype(jnp.float32)
    return Ws, bt, bg, out_dim, out_pad


def _vmem_capacity_bytes():
    try:
        return int(pltpu.get_tpu_info().vmem_capacity_bytes)
    except Exception:
        return 64 * 1024 * 1024            # conservative: v7x per-TC VMEM


def _choose_block_b(B, d_cat, out_pad, resident_bytes, vmem_cap):
    """Pick the largest batch tile that (a) fits double-buffered streams + resident
    weights in ~60% of VMEM, (b) is a multiple of 256 for large batches (v6e/v7x MXU
    M tile; also 128-aligned for v5e and 16-aligned for bf16 sublane packing), and
    (c) leaves >= 2 grid steps so the "parallel" axis shards across both v7x TCs."""
    per_row = 2 * (d_cat * 4 + out_pad * 2 + 4 * 4)         # dbl-buffered in/out tiles
    budget = int(0.6 * vmem_cap) - resident_bytes
    cap = max(budget // per_row, 256)
    if B <= 256:
        return _round_up(B, 8 if B <= 8 else 16)
    tb = min(cap, 4096, _round_up(pl.cdiv(B, 2), 256))
    return max(256, (tb // 256) * 256)


def four_way_gmu(x_h, x_g, x_z, x_f, packed, *, block_b=None):
    """Pallas forward of FourWayGMU. Returns (h_fusion [B, out] bf16, gates [B, 4] f32)."""
    Ws, bt, bg, out_dim, out_pad = packed
    dims = tuple(int(w.shape[0]) for w in Ws)
    ncols = int(Ws[0].shape[1])
    d_cat = sum(dims)
    B = x_h.shape[0]

    vmem_cap = _vmem_capacity_bytes()
    resident = sum(d * ncols * 2 for d in dims) + 4 * out_pad * 4 + 4 * 4
    tb = block_b if block_b is not None else _choose_block_b(
        B, d_cat, out_pad, resident, vmem_cap)
    b_pad = _round_up(B, tb)

    xs = [x_h, x_g, x_z, x_f]
    if b_pad != B:
        xs = [jnp.pad(x, ((0, b_pad - B), (0, 0))) for x in xs]

    grid = (b_pad // tb,)
    kernel = functools.partial(_gmu_kernel, out_pad=out_pad)

    cost = pl.CostEstimate(
        flops=2 * b_pad * sum(d * ncols for d in dims),
        transcendentals=b_pad * (4 * out_pad + 4),
        bytes_accessed=(b_pad * d_cat * 4                     # f32 inputs
                        + sum(d * ncols for d in dims) * 2    # bf16 packed weights
                        + 4 * out_pad * 4 + 4 * 4             # biases
                        + b_pad * out_pad * 2                 # bf16 fused slab
                        + b_pad * 4 * 4),                     # f32 gates
    )

    out_shape = (jax.ShapeDtypeStruct((b_pad, out_pad), jnp.bfloat16),
                 jax.ShapeDtypeStruct((b_pad, 4), jnp.float32))
    out_specs = (pl.BlockSpec((tb, out_pad), lambda i: (i, 0)),
                 pl.BlockSpec((tb, 4), lambda i: (i, 0)))
    params = pltpu.CompilerParams(
        dimension_semantics=("parallel",),                    # shard tiles over TCs (v7x)
        vmem_limit_bytes=min(int(0.75 * vmem_cap), 100 * 1024 * 1024),
    )

    def _run(single_buffer_resident):
        res_kw = dict(pipeline_mode=pl.Buffered(1)) if single_buffer_resident else {}
        in_specs = (
            [pl.BlockSpec((tb, d), lambda i: (i, 0)) for d in dims]       # streamed
            + [pl.BlockSpec((d, ncols), lambda i: (0, 0), **res_kw) for d in dims]
            + [pl.BlockSpec((4, out_pad), lambda i: (0, 0), **res_kw),
               pl.BlockSpec((1, 4), lambda i: (0, 0), **res_kw)]
        )
        return pl.pallas_call(
            kernel, out_shape=out_shape, grid=grid,
            in_specs=in_specs, out_specs=out_specs,
            compiler_params=params, cost_estimate=cost,
        )(*xs, *Ws, bt, bg)

    try:
        # Constant index_map -> single-buffer resident weights/biases (halves their VMEM).
        fused_slab, gates = _run(True)
    except Exception:
        # Fallback for jax versions without BlockSpec.pipeline_mode / Buffered(1).
        fused_slab, gates = _run(False)

    return fused_slab[:B, :out_dim], gates[:B]


def init_params(key, dim_h, dim_g, dim_z, dim_f, output_dim):
    """Deterministic synthetic params. Weights stored [in, out]; biases [1, out]."""
    ks = jax.random.split(key, 10)

    def lin(kw, kb, d_in, d_out):
        bound = 1.0 / jnp.sqrt(d_in)
        W = jax.random.uniform(kw, (d_in, d_out), jnp.float32, -bound, bound)
        b = jax.random.uniform(kb, (1, d_out), jnp.float32, -bound, bound)
        return W, b

    W_h, b_h = lin(ks[0], ks[1], dim_h, output_dim)
    W_g, b_g = lin(ks[2], ks[3], dim_g, output_dim)
    W_z, b_z = lin(ks[4], ks[5], dim_z, output_dim)
    W_f, b_f = lin(ks[6], ks[7], dim_f, output_dim)

    d_cat = dim_h + dim_g + dim_z + dim_f
    bound = 1.0 / jnp.sqrt(d_cat)
    W_gate = jax.random.uniform(ks[8], (d_cat, 4), jnp.float32, -bound, bound)
    b_gate = jnp.ones((1, 4), jnp.float32)   # module sets gate bias to [1,1,1,1]

    return dict(
        W_h=W_h, b_h=b_h, W_g=W_g, b_g=b_g, W_z=W_z, b_z=b_z, W_f=W_f, b_f=b_f,
        Wgate_h=W_gate[:dim_h],
        Wgate_g=W_gate[dim_h:dim_h + dim_g],
        Wgate_z=W_gate[dim_h + dim_g:dim_h + dim_g + dim_z],
        Wgate_f=W_gate[dim_h + dim_g + dim_z:],
        b_gate=b_gate,
    )


def reference_forward(x_h, x_g, x_z, x_f, p, *, mxu_dtype=jnp.float32):
    """Pure-JAX reference mirroring the torch module (eval mode)."""
    def mm(x, w):
        return jnp.dot(x.astype(mxu_dtype), w.astype(mxu_dtype),
                       preferred_element_type=jnp.float32)

    h_h = jnp.tanh(mm(x_h, p["W_h"]) + p["b_h"])
    h_g = jnp.tanh(mm(x_g, p["W_g"]) + p["b_g"])
    h_z = jnp.tanh(mm(x_z, p["W_z"]) + p["b_z"])
    h_f = jnp.tanh(mm(x_f, p["W_f"]) + p["b_f"])
    logits = (mm(x_h, p["Wgate_h"]) + mm(x_g, p["Wgate_g"])
              + mm(x_z, p["Wgate_z"]) + mm(x_f, p["Wgate_f"]) + p["b_gate"])
    gates = jax.nn.softmax(logits, axis=-1)
    fused = (gates[:, 0:1] * h_h + gates[:, 1:2] * h_g
             + gates[:, 2:3] * h_z + gates[:, 3:4] * h_f)
    return fused, gates


if __name__ == "__main__":
    B = 8
    dim_h, dim_g, dim_z, dim_f = 16, 24, 32, 8
    output_dim = 32

    key = jax.random.PRNGKey(0)
    k_in, k_par = jax.random.split(key)
    kh, kg, kz, kf = jax.random.split(k_in, 4)
    x_h = jax.random.normal(kh, (B, dim_h), jnp.float32)
    x_g = jax.random.normal(kg, (B, dim_g), jnp.float32)
    x_z = jax.random.normal(kz, (B, dim_z), jnp.float32)
    x_f = jax.random.normal(kf, (B, dim_f), jnp.float32)

    params = init_params(k_par, dim_h, dim_g, dim_z, dim_f, output_dim)
    packed = pack_params(params)

    fused, gates = four_way_gmu(x_h, x_g, x_z, x_f, packed)
    jax.block_until_ready((fused, gates))

    assert fused.shape == (B, output_dim) and gates.shape == (B, 4)
    fused_f32 = fused.astype(jnp.float32)

    # Tight check vs a reference using the same bf16 MXU operands (fused output is
    # bf16 -> ~1e-3 quantization; gates are f32 but use an approx EUP reciprocal).
    ref_f_bf16, ref_g_bf16 = reference_forward(
        x_h, x_g, x_z, x_f, params, mxu_dtype=jnp.bfloat16)
    assert jnp.allclose(fused_f32, ref_f_bf16, atol=1e-2, rtol=1e-2)
    assert jnp.allclose(gates, ref_g_bf16, atol=5e-3, rtol=5e-3)

    # Semantic check vs the full-f32 reference (tolerance relaxed for bf16 operands).
    ref_f, ref_g = reference_forward(x_h, x_g, x_z, x_f, params)
    assert jnp.allclose(fused_f32, ref_f, atol=5e-2, rtol=5e-2)
    assert jnp.allclose(gates, ref_g, atol=5e-2, rtol=5e-2)

    print("KERNEL_OK")
</pallas_src>

<mosaic_0001>
module attributes {stable_mosaic.version = 11 : i64} {
  func.func @_gmu_kernel(%arg0: i32, %arg1: memref<8x16xf32, #tpu.memory_space<vmem>>, %arg2: memref<8x24xf32, #tpu.memory_space<vmem>>, %arg3: memref<8x32xf32, #tpu.memory_space<vmem>>, %arg4: memref<8x8xf32, #tpu.memory_space<vmem>>, %arg5: memref<16x256xbf16, #tpu.memory_space<vmem>>, %arg6: memref<24x256xbf16, #tpu.memory_space<vmem>>, %arg7: memref<32x256xbf16, #tpu.memory_space<vmem>>, %arg8: memref<8x256xbf16, #tpu.memory_space<vmem>>, %arg9: memref<4x128xf32, #tpu.memory_space<vmem>>, %arg10: memref<1x4xf32, #tpu.memory_space<vmem>>, %arg11: memref<8x128xbf16, #tpu.memory_space<vmem>>, %arg12: memref<8x4xf32, #tpu.memory_space<vmem>>) attributes {dimension_semantics = [#tpu.dimension_semantics<parallel>], iteration_bounds = array<i64: 1>, scalar_prefetch = 0 : i64, scratch_operands = 0 : i64, tpu.core_type = #tpu.core_type<tc>, window_params = [{transform_indices = @transform_0, window_bounds = array<i64: 8, 16>}, {transform_indices = @transform_1, window_bounds = array<i64: 8, 24>}, {transform_indices = @transform_2, window_bounds = array<i64: 8, 32>}, {transform_indices = @transform_3, window_bounds = array<i64: 8, 8>}, {pipeline_mode = #tpu.pipeline_mode<synchronous>, transform_indices = @transform_4, window_bounds = array<i64: 16, 256>}, {pipeline_mode = #tpu.pipeline_mode<synchronous>, transform_indices = @transform_5, window_bounds = array<i64: 24, 256>}, {pipeline_mode = #tpu.pipeline_mode<synchronous>, transform_indices = @transform_6, window_bounds = array<i64: 32, 256>}, {pipeline_mode = #tpu.pipeline_mode<synchronous>, transform_indices = @transform_7, window_bounds = array<i64: 8, 256>}, {pipeline_mode = #tpu.pipeline_mode<synchronous>, transform_indices = @transform_8, window_bounds = array<i64: 4, 128>}, {pipeline_mode = #tpu.pipeline_mode<synchronous>, transform_indices = @transform_9, window_bounds = array<i64: 1, 4>}, {transform_indices = @transform_10, window_bounds = array<i64: 8, 128>}, {transform_indices = @transform_11, window_bounds = array<i64: 8, 4>}]} {
    %c0 = arith.constant 0 : index
    %c0_0 = arith.constant 0 : index
    %0 = vector.load %arg1[%c0, %c0_0] : memref<8x16xf32, #tpu.memory_space<vmem>>, vector<8x16xf32>
    %1 = arith.truncf %0 : vector<8x16xf32> to vector<8x16xbf16>
    %c0_1 = arith.constant 0 : index
    %c0_2 = arith.constant 0 : index
    %2 = vector.load %arg5[%c0_1, %c0_2] : memref<16x256xbf16, #tpu.memory_space<vmem>>, vector<16x256xbf16>
    %cst = arith.constant dense<0.000000e+00> : vector<8x256xf32>
    %3 = tpu.matmul %1, %2, %cst {dimension_numbers = #tpu.dot_dimension_numbers<[1], [0], [0], [1], [0, 0, 1, 1], [], []>} : vector<8x16xbf16>, vector<16x256xbf16>, vector<8x256xf32> -> vector<8x256xf32>
    %c0_3 = arith.constant 0 : index
    %c0_4 = arith.constant 0 : index
    %4 = vector.load %arg2[%c0_3, %c0_4] : memref<8x24xf32, #tpu.memory_space<vmem>>, vector<8x24xf32>
    %5 = arith.truncf %4 : vector<8x24xf32> to vector<8x24xbf16>
    %c0_5 = arith.constant 0 : index
    %c0_6 = arith.constant 0 : index
    %6 = vector.load %arg6[%c0_5, %c0_6] : memref<24x256xbf16, #tpu.memory_space<vmem>>, vector<24x256xbf16>
    %cst_7 = arith.constant dense<0.000000e+00> : vector<8x256xf32>
    %7 = tpu.matmul %5, %6, %cst_7 {dimension_numbers = #tpu.dot_dimension_numbers<[1], [0], [0], [1], [0, 0, 1, 1], [], []>} : vector<8x24xbf16>, vector<24x256xbf16>, vector<8x256xf32> -> vector<8x256xf32>
    %c0_8 = arith.constant 0 : index
    %c0_9 = arith.constant 0 : index
    %8 = vector.load %arg3[%c0_8, %c0_9] : memref<8x32xf32, #tpu.memory_space<vmem>>, vector<8x32xf32>
    %9 = arith.truncf %8 : vector<8x32xf32> to vector<8x32xbf16>
    %c0_10 = arith.constant 0 : index
    %c0_11 = arith.constant 0 : index
    %10 = vector.load %arg7[%c0_10, %c0_11] : memref<32x256xbf16, #tpu.memory_space<vmem>>, vector<32x256xbf16>
    %cst_12 = arith.constant dense<0.000000e+00> : vector<8x256xf32>
    %11 = tpu.matmul %9, %10, %cst_12 {dimension_numbers = #tpu.dot_dimension_numbers<[1], [0], [0], [1], [0, 0, 1, 1], [], []>} : vector<8x32xbf16>, vector<32x256xbf16>, vector<8x256xf32> -> vector<8x256xf32>
    %c0_13 = arith.constant 0 : index
    %c0_14 = arith.constant 0 : index
    %12 = vector.load %arg4[%c0_13, %c0_14] : memref<8x8xf32, #tpu.memory_space<vmem>>, vector<8x8xf32>
    %13 = arith.truncf %12 : vector<8x8xf32> to vector<8x8xbf16>
    %c0_15 = arith.constant 0 : index
    %c0_16 = arith.constant 0 : index
    %14 = vector.load %arg8[%c0_15, %c0_16] : memref<8x256xbf16, #tpu.memory_space<vmem>>, vector<8x256xbf16>
    %cst_17 = arith.constant dense<0.000000e+00> : vector<8x256xf32>
    %15 = tpu.matmul %13, %14, %cst_17 {dimension_numbers = #tpu.dot_dimension_numbers<[1], [0], [0], [1], [0, 0, 1, 1], [], []>} : vector<8x8xbf16>, vector<8x256xbf16>, vector<8x256xf32> -> vector<8x256xf32>
    %c0_18 = arith.constant 0 : index
    %c0_19 = arith.constant 0 : index
    %16 = vector.load %arg9[%c0_18, %c0_19] : memref<4x128xf32, #tpu.memory_space<vmem>>, vector<4x128xf32>
    %17 = vector.extract_strided_slice %3 {offsets = [0, 0], sizes = [8, 128], strides = [1, 1]} : vector<8x256xf32> to vector<8x128xf32>
    %18 = vector.extract_strided_slice %16 {offsets = [0, 0], sizes = [1, 128], strides = [1, 1]} : vector<4x128xf32> to vector<1x128xf32>
    %19 = vector.broadcast %18 : vector<1x128xf32> to vector<8x128xf32>
    %20 = arith.addf %17, %19 : vector<8x128xf32>
    %21 = math.tanh %20 : vector<8x128xf32>
    %22 = vector.extract_strided_slice %7 {offsets = [0, 0], sizes = [8, 128], strides = [1, 1]} : vector<8x256xf32> to vector<8x128xf32>
    %23 = vector.extract_strided_slice %16 {offsets = [1, 0], sizes = [1, 128], strides = [1, 1]} : vector<4x128xf32> to vector<1x128xf32>
    %24 = vector.broadcast %23 : vector<1x128xf32> to vector<8x128xf32>
    %25 = arith.addf %22, %24 : vector<8x128xf32>
    %26 = math.tanh %25 : vector<8x128xf32>
    %27 = vector.extract_strided_slice %11 {offsets = [0, 0], sizes = [8, 128], strides = [1, 1]} : vector<8x256xf32> to vector<8x128xf32>
    %28 = vector.extract_strided_slice %16 {offsets = [2, 0], sizes = [1, 128], strides = [1, 1]} : vector<4x128xf32> to vector<1x128xf32>
    %29 = vector.broadcast %28 : vector<1x128xf32> to vector<8x128xf32>
    %30 = arith.addf %27, %29 : vector<8x128xf32>
    %31 = math.tanh %30 : vector<8x128xf32>
    %32 = vector.extract_strided_slice %15 {offsets = [0, 0], sizes = [8, 128], strides = [1, 1]} : vector<8x256xf32> to vector<8x128xf32>
    %33 = vector.extract_strided_slice %16 {offsets = [3, 0], sizes = [1, 128], strides = [1, 1]} : vector<4x128xf32> to vector<1x128xf32>
    %34 = vector.broadcast %33 : vector<1x128xf32> to vector<8x128xf32>
    %35 = arith.addf %32, %34 : vector<8x128xf32>
    %36 = math.tanh %35 : vector<8x128xf32>
    %37 = vector.extract_strided_slice %3 {offsets = [0, 128], sizes = [8, 4], strides = [1, 1]} : vector<8x256xf32> to vector<8x4xf32>
    %38 = vector.extract_strided_slice %7 {offsets = [0, 128], sizes = [8, 4], strides = [1, 1]} : vector<8x256xf32> to vector<8x4xf32>
    %39 = arith.addf %37, %38 : vector<8x4xf32>
    %40 = vector.extract_strided_slice %11 {offsets = [0, 128], sizes = [8, 4], strides = [1, 1]} : vector<8x256xf32> to vector<8x4xf32>
    %41 = arith.addf %39, %40 : vector<8x4xf32>
    %42 = vector.extract_strided_slice %15 {offsets = [0, 128], sizes = [8, 4], strides = [1, 1]} : vector<8x256xf32> to vector<8x4xf32>
    %43 = arith.addf %41, %42 : vector<8x4xf32>
    %c0_20 = arith.constant 0 : index
    %c0_21 = arith.constant 0 : index
    %44 = vector.load %arg10[%c0_20, %c0_21] : memref<1x4xf32, #tpu.memory_space<vmem>>, vector<1x4xf32>
    %45 = vector.broadcast %44 : vector<1x4xf32> to vector<8x4xf32>
    %46 = arith.addf %43, %45 : vector<8x4xf32>
    %cst_22 = arith.constant dense<0xFF800000> : vector<8xf32>
    %47 = vector.multi_reduction <maximumf>, %46, %cst_22 [1] : vector<8x4xf32> to vector<8xf32>
    %48 = vector.shape_cast %47 : vector<8xf32> to vector<8x1xf32>
    %49 = vector.broadcast %48 : vector<8x1xf32> to vector<8x4xf32>
    %50 = arith.subf %46, %49 : vector<8x4xf32>
    %51 = math.exp %50 : vector<8x4xf32>
    %cst_23 = arith.constant dense<0.000000e+00> : vector<8xf32>
    %52 = vector.multi_reduction <add>, %51, %cst_23 [1] : vector<8x4xf32> to vector<8xf32>
    %53 = vector.shape_cast %52 : vector<8xf32> to vector<8x1xf32>
    %54 = tpu.reciprocal %53 {approx = true} : vector<8x1xf32> -> vector<8x1xf32>
    %55 = vector.broadcast %54 : vector<8x1xf32> to vector<8x4xf32>
    %56 = arith.mulf %51, %55 : vector<8x4xf32>
    %57 = vector.extract_strided_slice %56 {offsets = [0, 0], sizes = [8, 1], strides = [1, 1]} : vector<8x4xf32> to vector<8x1xf32>
    %58 = vector.broadcast %57 : vector<8x1xf32> to vector<8x128xf32>
    %59 = arith.mulf %58, %21 : vector<8x128xf32>
    %60 = vector.extract_strided_slice %56 {offsets = [0, 1], sizes = [8, 1], strides = [1, 1]} : vector<8x4xf32> to vector<8x1xf32>
    %61 = vector.broadcast %60 : vector<8x1xf32> to vector<8x128xf32>
    %62 = arith.mulf %61, %26 : vector<8x128xf32>
    %63 = arith.addf %59, %62 : vector<8x128xf32>
    %64 = vector.extract_strided_slice %56 {offsets = [0, 2], sizes = [8, 1], strides = [1, 1]} : vector<8x4xf32> to vector<8x1xf32>
    %65 = vector.broadcast %64 : vector<8x1xf32> to vector<8x128xf32>
    %66 = arith.mulf %65, %31 : vector<8x128xf32>
    %67 = arith.addf %63, %66 : vector<8x128xf32>
    %68 = vector.extract_strided_slice %56 {offsets = [0, 3], sizes = [8, 1], strides = [1, 1]} : vector<8x4xf32> to vector<8x1xf32>
    %69 = vector.broadcast %68 : vector<8x1xf32> to vector<8x128xf32>
    %70 = arith.mulf %69, %36 : vector<8x128xf32>
    %71 = arith.addf %67, %70 : vector<8x128xf32>
    %72 = arith.truncf %71 : vector<8x128xf32> to vector<8x128xbf16>
    %c0_24 = arith.constant 0 : index
    %c0_25 = arith.constant 0 : index
    %73 = vector.load %arg11[%c0_24, %c0_25] : memref<8x128xbf16, #tpu.memory_space<vmem>>, vector<8x128xbf16>
    tpu.vector_store %arg11[%c0_24, %c0_25], %72 {strides = array<i32>} : memref<8x128xbf16, #tpu.memory_space<vmem>>, vector<8x128xbf16>,
    %c0_26 = arith.constant 0 : index
    %c0_27 = arith.constant 0 : index
    %74 = vector.load %arg12[%c0_26, %c0_27] : memref<8x4xf32, #tpu.memory_space<vmem>>, vector<8x4xf32>
    tpu.vector_store %arg12[%c0_26, %c0_27], %56 {strides = array<i32>} : memref<8x4xf32, #tpu.memory_space<vmem>>, vector<8x4xf32>,
    return
  }
  func.func @transform_0(%arg0: i32) -> (i32, i32) {
    %c0_i32 = arith.constant 0 : i32
    %c0_i32_0 = arith.constant 0 : i32
    return %arg0, %c0_i32 : i32, i32
  }
  func.func @transform_1(%arg0: i32) -> (i32, i32) {
    %c0_i32 = arith.constant 0 : i32
    %c0_i32_0 = arith.constant 0 : i32
    return %arg0, %c0_i32 : i32, i32
  }
  func.func @transform_2(%arg0: i32) -> (i32, i32) {
    %c0_i32 = arith.constant 0 : i32
    %c0_i32_0 = arith.constant 0 : i32
    return %arg0, %c0_i32 : i32, i32
  }
  func.func @transform_3(%arg0: i32) -> (i32, i32) {
    %c0_i32 = arith.constant 0 : i32
    %c0_i32_0 = arith.constant 0 : i32
    return %arg0, %c0_i32 : i32, i32
  }
  func.func @transform_4(%arg0: i32) -> (i32, i32) {
    %c0_i32 = arith.constant 0 : i32
    %c0_i32_0 = arith.constant 0 : i32
    %c0_i32_1 = arith.constant 0 : i32
    return %c0_i32, %c0_i32_0 : i32, i32
  }
  func.func @transform_5(%arg0: i32) -> (i32, i32) {
    %c0_i32 = arith.constant 0 : i32
    %c0_i32_0 = arith.constant 0 : i32
    %c0_i32_1 = arith.constant 0 : i32
    return %c0_i32, %c0_i32_0 : i32, i32
  }
  func.func @transform_6(%arg0: i32) -> (i32, i32) {
    %c0_i32 = arith.constant 0 : i32
    %c0_i32_0 = arith.constant 0 : i32
    %c0_i32_1 = arith.constant 0 : i32
    return %c0_i32, %c0_i32_0 : i32, i32
  }
  func.func @transform_7(%arg0: i32) -> (i32, i32) {
    %c0_i32 = arith.constant 0 : i32
    %c0_i32_0 = arith.constant 0 : i32
    %c0_i32_1 = arith.constant 0 : i32
    return %c0_i32, %c0_i32_0 : i32, i32
  }
  func.func @transform_8(%arg0: i32) -> (i32, i32) {
    %c0_i32 = arith.constant 0 : i32
    %c0_i32_0 = arith.constant 0 : i32
    %c0_i32_1 = arith.constant 0 : i32
    return %c0_i32, %c0_i32_0 : i32, i32
  }
  func.func @transform_9(%arg0: i32) -> (i32, i32) {
    %c0_i32 = arith.constant 0 : i32
    %c0_i32_0 = arith.constant 0 : i32
    %c0_i32_1 = arith.constant 0 : i32
    return %c0_i32, %c0_i32_0 : i32, i32
  }
  func.func @transform_10(%arg0: i32) -> (i32, i32) {
    %c0_i32 = arith.constant 0 : i32
    %c0_i32_0 = arith.constant 0 : i32
    return %arg0, %c0_i32 : i32, i32
  }
  func.func @transform_11(%arg0: i32) -> (i32, i32) {
    %c0_i32 = arith.constant 0 : i32
    %c0_i32_0 = arith.constant 0 : i32
    return %arg0, %c0_i32 : i32, i32
  }
}

module attributes {stable_mosaic.version = 11 : i64} {
  func.func @_gmu_kernel(%arg0: i32, %arg1: memref<8x16xf32, #tpu.memory_space<vmem>>, %arg2: memref<8x24xf32, #tpu.memory_space<vmem>>, %arg3: memref<8x32xf32, #tpu.memory_space<vmem>>, %arg4: memref<8x8xf32, #tpu.memory_space<vmem>>, %arg5: memref<16x256xbf16, #tpu.memory_space<vmem>>, %arg6: memref<24x256xbf16, #tpu.memory_space<vmem>>, %arg7: memref<32x256xbf16, #tpu.memory_space<vmem>>, %arg8: memref<8x256xbf16, #tpu.memory_space<vmem>>, %arg9: memref<4x128xf32, #tpu.memory_space<vmem>>, %arg10: memref<1x4xf32, #tpu.memory_space<vmem>>, %arg11: memref<8x128xbf16, #tpu.memory_space<vmem>>, %arg12: memref<8x4xf32, #tpu.memory_space<vmem>>) attributes {dimension_semantics = [#tpu.dimension_semantics<parallel>], iteration_bounds = array<i64: 1>, scalar_prefetch = 0 : i64, scratch_operands = 0 : i64, tpu.core_type = #tpu.core_type<tc>, window_params = [{transform_indices = @transform_0, window_bounds = array<i64: 8, 16>}, {transform_indices = @transform_1, window_bounds = array<i64: 8, 24>}, {transform_indices = @transform_2, window_bounds = array<i64: 8, 32>}, {transform_indices = @transform_3, window_bounds = array<i64: 8, 8>}, {pipeline_mode = #tpu.pipeline_mode<synchronous>, transform_indices = @transform_4, window_bounds = array<i64: 16, 256>}, {pipeline_mode = #tpu.pipeline_mode<synchronous>, transform_indices = @transform_5, window_bounds = array<i64: 24, 256>}, {pipeline_mode = #tpu.pipeline_mode<synchronous>, transform_indices = @transform_6, window_bounds = array<i64: 32, 256>}, {pipeline_mode = #tpu.pipeline_mode<synchronous>, transform_indices = @transform_7, window_bounds = array<i64: 8, 256>}, {pipeline_mode = #tpu.pipeline_mode<synchronous>, transform_indices = @transform_8, window_bounds = array<i64: 4, 128>}, {pipeline_mode = #tpu.pipeline_mode<synchronous>, transform_indices = @transform_9, window_bounds = array<i64: 1, 4>}, {transform_indices = @transform_10, window_bounds = array<i64: 8, 128>}, {transform_indices = @transform_11, window_bounds = array<i64: 8, 4>}]} {
    %c0 = arith.constant 0 : index
    %c0_0 = arith.constant 0 : index
    %0 = vector.load %arg1[%c0, %c0_0] : memref<8x16xf32, #tpu.memory_space<vmem>>, vector<8x16xf32>
    %1 = arith.truncf %0 : vector<8x16xf32> to vector<8x16xbf16>
    %c0_1 = arith.constant 0 : index
    %c0_2 = arith.constant 0 : index
    %2 = vector.load %arg5[%c0_1, %c0_2] : memref<16x256xbf16, #tpu.memory_space<vmem>>, vector<16x256xbf16>
    %cst = arith.constant dense<0.000000e+00> : vector<8x256xf32>
    %3 = tpu.matmul %1, %2, %cst {dimension_numbers = #tpu.dot_dimension_numbers<[1], [0], [0], [1], [0, 0, 1, 1], [], []>} : vector<8x16xbf16>, vector<16x256xbf16>, vector<8x256xf32> -> vector<8x256xf32>
    %c0_3 = arith.constant 0 : index
    %c0_4 = arith.constant 0 : index
    %4 = vector.load %arg2[%c0_3, %c0_4] : memref<8x24xf32, #tpu.memory_space<vmem>>, vector<8x24xf32>
    %5 = arith.truncf %4 : vector<8x24xf32> to vector<8x24xbf16>
    %c0_5 = arith.constant 0 : index
    %c0_6 = arith.constant 0 : index
    %6 = vector.load %arg6[%c0_5, %c0_6] : memref<24x256xbf16, #tpu.memory_space<vmem>>, vector<24x256xbf16>
    %cst_7 = arith.constant dense<0.000000e+00> : vector<8x256xf32>
    %7 = tpu.matmul %5, %6, %cst_7 {dimension_numbers = #tpu.dot_dimension_numbers<[1], [0], [0], [1], [0, 0, 1, 1], [], []>} : vector<8x24xbf16>, vector<24x256xbf16>, vector<8x256xf32> -> vector<8x256xf32>
    %c0_8 = arith.constant 0 : index
    %c0_9 = arith.constant 0 : index
    %8 = vector.load %arg3[%c0_8, %c0_9] : memref<8x32xf32, #tpu.memory_space<vmem>>, vector<8x32xf32>
    %9 = arith.truncf %8 : vector<8x32xf32> to vector<8x32xbf16>
    %c0_10 = arith.constant 0 : index
    %c0_11 = arith.constant 0 : index
    %10 = vector.load %arg7[%c0_10, %c0_11] : memref<32x256xbf16, #tpu.memory_space<vmem>>, vector<32x256xbf16>
    %cst_12 = arith.constant dense<0.000000e+00> : vector<8x256xf32>
    %11 = tpu.matmul %9, %10, %cst_12 {dimension_numbers = #tpu.dot_dimension_numbers<[1], [0], [0], [1], [0, 0, 1, 1], [], []>} : vector<8x32xbf16>, vector<32x256xbf16>, vector<8x256xf32> -> vector<8x256xf32>
    %c0_13 = arith.constant 0 : index
    %c0_14 = arith.constant 0 : index
    %12 = vector.load %arg4[%c0_13, %c0_14] : memref<8x8xf32, #tpu.memory_space<vmem>>, vector<8x8xf32>
    %13 = arith.truncf %12 : vector<8x8xf32> to vector<8x8xbf16>
    %c0_15 = arith.constant 0 : index
    %c0_16 = arith.constant 0 : index
    %14 = vector.load %arg8[%c0_15, %c0_16] : memref<8x256xbf16, #tpu.memory_space<vmem>>, vector<8x256xbf16>
    %cst_17 = arith.constant dense<0.000000e+00> : vector<8x256xf32>
    %15 = tpu.matmul %13, %14, %cst_17 {dimension_numbers = #tpu.dot_dimension_numbers<[1], [0], [0], [1], [0, 0, 1, 1], [], []>} : vector<8x8xbf16>, vector<8x256xbf16>, vector<8x256xf32> -> vector<8x256xf32>
    %c0_18 = arith.constant 0 : index
    %c0_19 = arith.constant 0 : index
    %16 = vector.load %arg9[%c0_18, %c0_19] : memref<4x128xf32, #tpu.memory_space<vmem>>, vector<4x128xf32>
    %17 = vector.extract_strided_slice %3 {offsets = [0, 0], sizes = [8, 128], strides = [1, 1]} : vector<8x256xf32> to vector<8x128xf32>
    %18 = vector.extract_strided_slice %16 {offsets = [0, 0], sizes = [1, 128], strides = [1, 1]} : vector<4x128xf32> to vector<1x128xf32>
    %19 = vector.broadcast %18 : vector<1x128xf32> to vector<8x128xf32>
    %20 = arith.addf %17, %19 : vector<8x128xf32>
    %21 = math.tanh %20 : vector<8x128xf32>
    %22 = vector.extract_strided_slice %7 {offsets = [0, 0], sizes = [8, 128], strides = [1, 1]} : vector<8x256xf32> to vector<8x128xf32>
    %23 = vector.extract_strided_slice %16 {offsets = [1, 0], sizes = [1, 128], strides = [1, 1]} : vector<4x128xf32> to vector<1x128xf32>
    %24 = vector.broadcast %23 : vector<1x128xf32> to vector<8x128xf32>
    %25 = arith.addf %22, %24 : vector<8x128xf32>
    %26 = math.tanh %25 : vector<8x128xf32>
    %27 = vector.extract_strided_slice %11 {offsets = [0, 0], sizes = [8, 128], strides = [1, 1]} : vector<8x256xf32> to vector<8x128xf32>
    %28 = vector.extract_strided_slice %16 {offsets = [2, 0], sizes = [1, 128], strides = [1, 1]} : vector<4x128xf32> to vector<1x128xf32>
    %29 = vector.broadcast %28 : vector<1x128xf32> to vector<8x128xf32>
    %30 = arith.addf %27, %29 : vector<8x128xf32>
    %31 = math.tanh %30 : vector<8x128xf32>
    %32 = vector.extract_strided_slice %15 {offsets = [0, 0], sizes = [8, 128], strides = [1, 1]} : vector<8x256xf32> to vector<8x128xf32>
    %33 = vector.extract_strided_slice %16 {offsets = [3, 0], sizes = [1, 128], strides = [1, 1]} : vector<4x128xf32> to vector<1x128xf32>
    %34 = vector.broadcast %33 : vector<1x128xf32> to vector<8x128xf32>
    %35 = arith.addf %32, %34 : vector<8x128xf32>
    %36 = math.tanh %35 : vector<8x128xf32>
    %37 = vector.extract_strided_slice %3 {offsets = [0, 128], sizes = [8, 4], strides = [1, 1]} : vector<8x256xf32> to vector<8x4xf32>
    %38 = vector.extract_strided_slice %7 {offsets = [0, 128], sizes = [8, 4], strides = [1, 1]} : vector<8x256xf32> to vector<8x4xf32>
    %39 = arith.addf %37, %38 : vector<8x4xf32>
    %40 = vector.extract_strided_slice %11 {offsets = [0, 128], sizes = [8, 4], strides = [1, 1]} : vector<8x256xf32> to vector<8x4xf32>
    %41 = arith.addf %39, %40 : vector<8x4xf32>
    %42 = vector.extract_strided_slice %15 {offsets = [0, 128], sizes = [8, 4], strides = [1, 1]} : vector<8x256xf32> to vector<8x4xf32>
    %43 = arith.addf %41, %42 : vector<8x4xf32>
    %c0_20 = arith.constant 0 : index
    %c0_21 = arith.constant 0 : index
    %44 = vector.load %arg10[%c0_20, %c0_21] : memref<1x4xf32, #tpu.memory_space<vmem>>, vector<1x4xf32>
    %45 = vector.broadcast %44 : vector<1x4xf32> to vector<8x4xf32>
    %46 = arith.addf %43, %45 : vector<8x4xf32>
    %cst_22 = arith.constant dense<0xFF800000> : vector<8xf32>
    %47 = vector.multi_reduction <maximumf>, %46, %cst_22 [1] : vector<8x4xf32> to vector<8xf32>
    %48 = vector.shape_cast %47 : vector<8xf32> to vector<8x1xf32>
    %49 = vector.broadcast %48 : vector<8x1xf32> to vector<8x4xf32>
    %50 = arith.subf %46, %49 : vector<8x4xf32>
    %51 = math.exp %50 : vector<8x4xf32>
    %cst_23 = arith.constant dense<0.000000e+00> : vector<8xf32>
    %52 = vector.multi_reduction <add>, %51, %cst_23 [1] : vector<8x4xf32> to vector<8xf32>
    %53 = vector.shape_cast %52 : vector<8xf32> to vector<8x1xf32>
    %54 = tpu.reciprocal %53 {approx = true} : vector<8x1xf32> -> vector<8x1xf32>
    %55 = vector.broadcast %54 : vector<8x1xf32> to vector<8x4xf32>
    %56 = arith.mulf %51, %55 : vector<8x4xf32>
    %57 = vector.extract_strided_slice %56 {offsets = [0, 0], sizes = [8, 1], strides = [1, 1]} : vector<8x4xf32> to vector<8x1xf32>
    %58 = vector.broadcast %57 : vector<8x1xf32> to vector<8x128xf32>
    %59 = arith.mulf %58, %21 : vector<8x128xf32>
    %60 = vector.extract_strided_slice %56 {offsets = [0, 1], sizes = [8, 1], strides = [1, 1]} : vector<8x4xf32> to vector<8x1xf32>
    %61 = vector.broadcast %60 : vector<8x1xf32> to vector<8x128xf32>
    %62 = arith.mulf %61, %26 : vector<8x128xf32>
    %63 = arith.addf %59, %62 : vector<8x128xf32>
    %64 = vector.extract_strided_slice %56 {offsets = [0, 2], sizes = [8, 1], strides = [1, 1]} : vector<8x4xf32> to vector<8x1xf32>
    %65 = vector.broadcast %64 : vector<8x1xf32> to vector<8x128xf32>
    %66 = arith.mulf %65, %31 : vector<8x128xf32>
    %67 = arith.addf %63, %66 : vector<8x128xf32>
    %68 = vector.extract_strided_slice %56 {offsets = [0, 3], sizes = [8, 1], strides = [1, 1]} : vector<8x4xf32> to vector<8x1xf32>
    %69 = vector.broadcast %68 : vector<8x1xf32> to vector<8x128xf32>
    %70 = arith.mulf %69, %36 : vector<8x128xf32>
    %71 = arith.addf %67, %70 : vector<8x128xf32>
    %72 = arith.truncf %71 : vector<8x128xf32> to vector<8x128xbf16>
    %c0_24 = arith.constant 0 : index
    %c0_25 = arith.constant 0 : index
    %73 = vector.load %arg11[%c0_24, %c0_25] : memref<8x128xbf16, #tpu.memory_space<vmem>>, vector<8x128xbf16>
    tpu.vector_store %arg11[%c0_24, %c0_25], %72 {strides = array<i32>} : memref<8x128xbf16, #tpu.memory_space<vmem>>, vector<8x128xbf16>,
    %c0_26 = arith.constant 0 : index
    %c0_27 = arith.constant 0 : index
    %74 = vector.load %arg12[%c0_26, %c0_27] : memref<8x4xf32, #tpu.memory_space<vmem>>, vector<8x4xf32>
    tpu.vector_store %arg12[%c0_26, %c0_27], %56 {strides = array<i32>} : memref<8x4xf32, #tpu.memory_space<vmem>>, vector<8x4xf32>,
    return
  }
  func.func @transform_0(%arg0: i32) -> (i32, i32) {
    %c0_i32 = arith.constant 0 : i32
    %c0_i32_0 = arith.constant 0 : i32
    return %arg0, %c0_i32 : i32, i32
  }
  func.func @transform_1(%arg0: i32) -> (i32, i32) {
    %c0_i32 = arith.constant 0 : i32
    %c0_i32_0 = arith.constant 0 : i32
    return %arg0, %c0_i32 : i32, i32
  }
  func.func @transform_2(%arg0: i32) -> (i32, i32) {
    %c0_i32 = arith.constant 0 : i32
    %c0_i32_0 = arith.constant 0 : i32
    return %arg0, %c0_i32 : i32, i32
  }
  func.func @transform_3(%arg0: i32) -> (i32, i32) {
    %c0_i32 = arith.constant 0 : i32
    %c0_i32_0 = arith.constant 0 : i32
    return %arg0, %c0_i32 : i32, i32
  }
  func.func @transform_4(%arg0: i32) -> (i32, i32) {
    %c0_i32 = arith.constant 0 : i32
    %c0_i32_0 = arith.constant 0 : i32
    %c0_i32_1 = arith.constant 0 : i32
    return %c0_i32, %c0_i32_0 : i32, i32
  }
  func.func @transform_5(%arg0: i32) -> (i32, i32) {
    %c0_i32 = arith.constant 0 : i32
    %c0_i32_0 = arith.constant 0 : i32
    %c0_i32_1 = arith.constant 0 : i32
    return %c0_i32, %c0_i32_0 : i32, i32
  }
  func.func @transform_6(%arg0: i32) -> (i32, i32) {
    %c0_i32 = arith.constant 0 : i32
    %c0_i32_0 = arith.constant 0 : i32
    %c0_i32_1 = arith.constant 0 : i32
    return %c0_i32, %c0_i32_0 : i32, i32
  }
  func.func @transform_7(%arg0: i32) -> (i32, i32) {
    %c0_i32 = arith.constant 0 : i32
    %c0_i32_0 = arith.constant 0 : i32
    %c0_i32_1 = arith.constant 0 : i32
    return %c0_i32, %c0_i32_0 : i32, i32
  }
  func.func @transform_8(%arg0: i32) -> (i32, i32) {
    %c0_i32 = arith.constant 0 : i32
    %c0_i32_0 = arith.constant 0 : i32
    %c0_i32_1 = arith.constant 0 : i32
    return %c0_i32, %c0_i32_0 : i32, i32
  }
  func.func @transform_9(%arg0: i32) -> (i32, i32) {
    %c0_i32 = arith.constant 0 : i32
    %c0_i32_0 = arith.constant 0 : i32
    %c0_i32_1 = arith.constant 0 : i32
    return %c0_i32, %c0_i32_0 : i32, i32
  }
  func.func @transform_10(%arg0: i32) -> (i32, i32) {
    %c0_i32 = arith.constant 0 : i32
    %c0_i32_0 = arith.constant 0 : i32
    return %arg0, %c0_i32 : i32, i32
  }
  func.func @transform_11(%arg0: i32) -> (i32, i32) {
    %c0_i32 = arith.constant 0 : i32
    %c0_i32_0 = arith.constant 0 : i32
    return %arg0, %c0_i32 : i32, i32
  }
}

</mosaic_0001>

<bundles_post_ra>
// kernel: tpu_custom_call.1
= control target key start
LH: loop header
LB: loop body
LE: loop exit
PB: predicated region body
PF: predicated region fallthrough
CT: control target
= control target key end

     0   :  { %17 = vsyncpa [#allocation3], 0  ;;  %s904_s0 = inlined_call_operand.hbm [shape: f32[8,16], index: 0, kind: input, shape index: {}]   ;;  %s905_s1 = inlined_call_operand.hbm [shape: f32[8,24], index: 1, kind: input, shape index: {}]   ;;  %s906_s2 = inlined_call_operand.hbm [shape: f32[8,32], index: 2, kind: input, shape index: {}]   ;;  %s907_s3 = inlined_call_operand.vmem [shape: f32[8,8], index: 3, kind: input, shape index: {}]   ;;  %s908_s4 = inlined_call_operand.hbm [shape: bf16[16,256], index: 4, kind: input, shape index: {}]   ;;  %s909_s5 = inlined_call_operand.hbm [shape: bf16[24,256], index: 5, kind: input, shape index: {}]   ;;  %s910_s6 = inlined_call_operand.hbm [shape: bf16[32,256], index: 6, kind: input, shape index: {}]   ;;  %s911_s7 = inlined_call_operand.vmem [shape: bf16[8,256], index: 7, kind: input, shape index: {}]   ;;  %s912_s8 = inlined_call_operand.vmem [shape: f32[4,128], index: 8, kind: input, shape index: {}]   ;;  %s913_s9 = inlined_call_operand.vmem [shape: f32[1,4], index: 9, kind: input, shape index: {}]   ;;  %s914_s10 = inlined_call_operand.hbm [shape: bf16[8,128], index: 10, kind: output, shape index: {0}]   ;;  %s915_s11 = inlined_call_operand.vmem [shape: f32[8,4], index: 11, kind: output, shape index: {1}]  }
   0x1   :  { %18 = vsyncpa [#allocation6], 0 }
   0x2   :  { %19 = vsyncpa [#allocation9], 0 }
   0x3   :  { %20 = vsyncpa [#allocation12], 0 }
   0x4   :  { %21 = vsyncpa [#allocation4], 0  ;;  %s702_s17 = smov [#allocation5]   ;;  %s703_s19 = smov [#allocation8]  }
   0x5   :  { %s38_s18 = sshll.u32 %s702_s17, 4  ;;  %s59_s20 = sshll.u32 %s703_s19, 4  ;;  %s39_s18 = int_to_ptr.vmem [resolvable:$true] %s38_s18  ;;  %s775_s20 = int_to_ptr.vmem [resolvable:$true] %s59_s20 }
   0x6   :  { %s538_s23 = scalar_lea.hbm %s905_s1, 128 }
   0x7   :  { %p539_p0 = scmp.ne.s32.totalorder %s905_s1, %s538_s23  ;;  %p542_p1 = scmp.lt.u32.totalorder %s538_s23, %s905_s1 }
   0x9   :  { %p544_p2 = pnand %p542_p1, %p539_p0 }
   0xb   :  { %547 = shalt.err (!%p544_p2)
}
   0xc   :  { %s548_s28 = scalar_lea.vmem %s39_s18, 128  ;;  %p553_p4 = scmp.lt.s32.totalorder %s39_s18, %s39_s18 }
   0xd   :  { %p549_p3 = scmp.ne.s32.totalorder %s39_s18, %s548_s28  ;;  %p554_p5 = scmp.lt.s32.totalorder %s548_s28, %s548_s28 }
   0xf   :  { %p555_p6 = por %p554_p5, %p553_p4 }
  0x11   :  { %p556_p7 = pnand %p555_p6, %p549_p3 }
  0x13   :  { %559 = shalt.err (!%p556_p7)
}
  0x14   :  { %41 = dma.hbm_to_vmem [thread:$0]  %s905_s1, 128, %s39_s18, [#allocation6]  }
  0x15   :  { %s560_s14 = scalar_lea.hbm %s908_s4, 256 }
  0x16   :  { %p561_p8 = scmp.ne.s32.totalorder %s908_s4, %s560_s14  ;;  %p564_p9 = scmp.lt.u32.totalorder %s560_s14, %s908_s4 }
  0x18   :  { %p566_p10 = pnand %p564_p9, %p561_p8 }
  0x1a   :  { %569 = shalt.err (!%p566_p10)
}
  0x1b   :  { %s570_s21 = scalar_lea.vmem %s775_s20, 256  ;;  %p575_p12 = scmp.lt.s32.totalorder %s775_s20, %s775_s20 }
  0x1c   :  { %p571_p11 = scmp.ne.s32.totalorder %s775_s20, %s570_s21  ;;  %p576_p13 = scmp.lt.s32.totalorder %s570_s21, %s570_s21 }
  0x1e   :  { %p577_p0 = por %p576_p13, %p575_p12 }
  0x20   :  { %p578_p1 = pnand %p577_p0, %p571_p11 }
  0x22   :  { %581 = shalt.err (!%p578_p1)
}
  0x23   :  { %s704_s1 = smov 128   ;;  %s705_s18 = smov 8  }
  0x24   :  { %65 = dma.hbm_to_vmem [thread:$0]  %s908_s4, 256, %s775_s20, [#allocation9], %s704_s1, %s704_s1, %s705_s18  }
  0x25   :  { %s706_s24 = smov [#allocation2]   ;;  %s707_s26 = smov [#allocation7]  }
  0x26   :  { %s28_s25 = sshll.u32 %s706_s24, 4  ;;  %s48_s27 = sshll.u32 %s707_s26, 4  ;;  %s29_s25 = int_to_ptr.vmem [resolvable:$true] %s28_s25  ;;  %s49_s27 = int_to_ptr.vmem [resolvable:$true] %s48_s27 }
  0x27   :  { %s582_s30 = scalar_lea.hbm %s904_s0, 128 }
  0x28   :  { %p583_p2 = scmp.ne.s32.totalorder %s904_s0, %s582_s30  ;;  %p586_p3 = scmp.lt.u32.totalorder %s582_s30, %s904_s0 }
  0x2a   :  { %p588_p4 = pnand %p586_p3, %p583_p2 }
  0x2c   :  { %591 = shalt.err (!%p588_p4)
}
  0x2d   :  { %s592_s4 = scalar_lea.vmem %s29_s25, 128  ;;  %p597_p6 = scmp.lt.s32.totalorder %s29_s25, %s29_s25 }
  0x2e   :  { %p593_p5 = scmp.ne.s32.totalorder %s29_s25, %s592_s4  ;;  %p598_p7 = scmp.lt.s32.totalorder %s592_s4, %s592_s4 }
  0x30   :  { %p599_p8 = por %p598_p7, %p597_p6 }
  0x32   :  { %p600_p9 = pnand %p599_p8, %p593_p5 }
  0x34   :  { %603 = shalt.err (!%p600_p9)
}
  0x35   :  { %31 = dma.hbm_to_vmem [thread:$0]  %s904_s0, 128, %s29_s25, [#allocation3]  }
  0x36   :  { %s604_s21 = scalar_lea.hbm %s906_s2, 128 }
  0x37   :  { %p605_p10 = scmp.ne.s32.totalorder %s906_s2, %s604_s21  ;;  %p608_p11 = scmp.lt.u32.totalorder %s604_s21, %s906_s2 }
  0x39   :  { %p610_p12 = pnand %p608_p11, %p605_p10 }
  0x3b   :  { %613 = shalt.err (!%p610_p12)
}
  0x3c   :  { %s614_s28 = scalar_lea.vmem %s49_s27, 128  ;;  %p619_p0 = scmp.lt.s32.totalorder %s49_s27, %s49_s27 }
  0x3d   :  { %p615_p13 = scmp.ne.s32.totalorder %s49_s27, %s614_s28  ;;  %p620_p1 = scmp.lt.s32.totalorder %s614_s28, %s614_s28 }
  0x3f   :  { %p621_p2 = por %p620_p1, %p619_p0 }
  0x41   :  { %p622_p3 = pnand %p621_p2, %p615_p13 }
  0x43   :  { %625 = shalt.err (!%p622_p3)
}
  0x44   :  { %51 = dma.hbm_to_vmem [thread:$0]  %s906_s2, 128, %s49_s27, [#allocation6]  }
  0x45   :  { %s708_s29 = smov [#allocation10]   ;;  %s709_s12 = smov [#allocation11]  }
  0x46   :  { %s71_s30 = sshll.u32 %s708_s29, 4  ;;  %s83_s13 = sshll.u32 %s709_s12, 4  ;;  %s72_s30 = int_to_ptr.vmem [resolvable:$true] %s71_s30  ;;  %s833_s13 = int_to_ptr.vmem [resolvable:$true] %s83_s13 }
  0x47   :  { %s626_s4 = scalar_lea.hbm %s909_s5, 384 }
  0x48   :  { %p627_p4 = scmp.ne.s32.totalorder %s909_s5, %s626_s4  ;;  %p630_p5 = scmp.lt.u32.totalorder %s626_s4, %s909_s5 }
  0x4a   :  { %p632_p6 = pnand %p630_p5, %p627_p4 }
  0x4c   :  { %635 = shalt.err (!%p632_p6)
}
  0x4d   :  { %s636_s2 = scalar_lea.vmem %s72_s30, 384  ;;  %p641_p8 = scmp.lt.s32.totalorder %s72_s30, %s72_s30 }
  0x4e   :  { %p637_p7 = scmp.ne.s32.totalorder %s72_s30, %s636_s2  ;;  %p642_p9 = scmp.lt.s32.totalorder %s636_s2, %s636_s2 }
  0x50   :  { %p643_p10 = por %p642_p9, %p641_p8 }
  0x52   :  { %p644_p11 = pnand %p643_p10, %p637_p7 }
  0x54   :  { %647 = shalt.err (!%p644_p11)
}
  0x55   :  { %77 = dma.hbm_to_vmem [thread:$0]  %s909_s5, 384, %s72_s30, [#allocation9], %s704_s1, %s704_s1, %s705_s18  }
  0x56   :  { %s648_s24 = scalar_lea.hbm %s910_s6, 512 }
  0x57   :  { %p649_p12 = scmp.ne.s32.totalorder %s910_s6, %s648_s24  ;;  %p652_p13 = scmp.lt.u32.totalorder %s648_s24, %s910_s6 }
  0x59   :  { %p654_p0 = pnand %p652_p13, %p649_p12 }
  0x5b   :  { %657 = shalt.err (!%p654_p0)
}
  0x5c   :  { %s658_s29 = scalar_lea.vmem %s833_s13, 512  ;;  %p663_p2 = scmp.lt.s32.totalorder %s833_s13, %s833_s13 }
  0x5d   :  { %p659_p1 = scmp.ne.s32.totalorder %s833_s13, %s658_s29  ;;  %p664_p3 = scmp.lt.s32.totalorder %s658_s29, %s658_s29 }
  0x5f   :  { %p665_p4 = por %p664_p3, %p663_p2 }
  0x61   :  { %p666_p5 = pnand %p665_p4, %p659_p1 }
  0x63   :  { %669 = shalt.err (!%p666_p5)
}
  0x64   :  { %89 = dma.hbm_to_vmem [thread:$0]  %s910_s6, 512, %s833_s13, [#allocation12], %s704_s1, %s704_s1, %s705_s18  }
  0x65   :  { %692 = dma.done.wait [#allocation3], 128  }
  0x66   :  { %693 = vsyncadd [#allocation3], 4294967168 }
  0x67   :  { %694 = dma.done.wait [#allocation6], 256  }
  0x68   :  { %695 = vsyncadd [#allocation6], 4294967040 }
  0x69   :  { %696 = dma.done.wait [#allocation9], 640  }
  0x6a   :  { %697 = vsyncadd [#allocation9], 4294966656 }
  0x6b   :  { %698 = dma.done.wait [#allocation12], 512  }
  0x6c   :  { %699 = vsyncadd [#allocation12], 4294966784  ;;  %v710_v0 = vmov 0   ;;  %v510_v1 = vld [vmem:[#allocation8 + $0x4] ss:$8 sps:$4 sm:$0xff]   ;;  %vm198_vm0 = vcmask 1043456   ;;  %v377_v58 = vlaneseq }
  0x6d   :  { %165 = vmatprep.mubr.bf16.mxu0 %v710_v0  ;;  %237 = vmatprep.mubr.bf16.mxu1 %v710_v0  ;;  %v512_v2 = vld [vmem:[#allocation10 + $0x4] ss:$8 sps:$4 sm:$0xff]   ;;  %v514_v3 = vld [vmem:[#allocation8] ss:$8 sps:$4 sm:$0xff]   ;;  %v515_v4 = vld [vmem:[#allocation10] ss:$8 sps:$4 sm:$0xff]  }
  0x6e   :  { %505 = vset.pattern.permute.xlu1 %v710_v0  ;;  %133 = vmatprep.subr.bf16.mxu0 %v510_v1  ;;  %v115_v5 = vld [vmem:[#allocation2] sm:$0xff]  ;;  %v178_v7 = vld [vmem:[#allocation10 + $0x10] sm:$0xff]  ;;  %vm129_vm1 = vcmask 130048   ;;  %v174_v12 = vld [vmem:[#allocation5] sm:$0xff]  ;;  %vm194_vm2 = vcmask 195584   ;;  %vm272_vm3 = vcmask 261120  }
  0x6f   :  { %205 = vmatprep.subr.bf16.mxu1 %v512_v2  ;;  %v116_v6 = vpack.c.bf16 %v115_v5, %v115_v5  ;;  %134 = vmatpush1.bf16.msra.mxu0 %v514_v3  ;;  %v479_v8 = vcombine.high %v178_v7, %v178_v7  ;;  %v517_v9 = vld [vmem:[#allocation11] ss:$8 sps:$4 sm:$0xff]   ;;  %v519_v10 = vld [vmem:[#allocation11 + $0x4] ss:$8 sps:$4 sm:$0xff]   ;;  %v478_v11 = vcombine.low %v178_v7, %v178_v7  ;;  %v523_v14 = vld [vmem:[#allocation11 + $0x14] ss:$8 sps:$4 sm:$0xff]  }
  0x70   :  { %206 = vmatpush1.bf16.msra.mxu1 %v515_v4  ;;  %276 = vmatprep.subr.bf16.mxu0 %v519_v10  ;;  %v319_v15 = vld [vmem:[%s911_s7] sm:$0xff]  ;;  %v175_v16 = vpack.c.bf16 %v174_v12, %v174_v12  ;;  %v246_v20 = vld [vmem:[#allocation7] sm:$0xff]  ;;  %vm325_vm4 = vcmask 64512   ;;  %vm412_vm5 = vcmask 31744   ;;  %v711_v52 = vmov 2  }
  0x71   :  { %480 = vmatprep.subr.msk.bf16.mxu1 %vm198_vm0, %v479_v8  ;;  %v200_v13 = vsel %vm198_vm0, %v478_v11, 0  ;;  %v488_v17 = vcombine.high %v319_v15, %v319_v15  ;;  %v487_v18 = vcombine.low %v319_v15, %v319_v15  ;;  %v521_v19 = vld [vmem:[#allocation11 + $0x10] ss:$8 sps:$4 sm:$0xff]   ;;  %v247_v22 = vpack.c.bf16 %v246_v20, %v246_v20  ;;  %507 = vset.pattern.permute.xlu0 %v711_v52 }
  0x72   :  { %475 = vmatmul.mubr.msk.bf16.vlgmr.msra.gmra.mrb[0].mxu0 %vm129_vm1, %v116_v6  ;;  %v317_v23 = vld [vmem:[%s907_s3] sm:$0xff]  ;;  %v712_v56 = vmov 1   ;;  %v713_v57 = vmov 3   ;;  %v378_v59 = vshrl.u32 %v377_v58, 7 }
  0x73   :  { %277 = vmatpush1.bf16.msra.mxu0 %v517_v9  ;;  %v330_v21 = vsel %vm198_vm0, %v487_v18, 0  ;;  %308 = vmatprep.mubr.bf16.mxu0 %v710_v0  ;;  %v318_v24 = vpack.c.bf16 %v317_v23, %v317_v23  ;;  %v491_v41 = vld [vmem:[%s913_s9] ss:$0 sm:$0xff] }
  0x74   :  { %208 = vmatpush1.bf16.msra.mxu1 %v200_v13  ;;  %278 = vmatprep.subr.bf16.mxu0 %v523_v14  ;;  %v379_v60 = vsub.s32 0, %v378_v59  ;;  %v376_v61 = vld [vmem:[%s912_s8] sm:$0xf]  ;;  %v385_v62 = vsub.s32 1, %v378_v59  ;;  %v391_v63 = vsub.s32 2, %v378_v59  ;;  %v397_v2 = vsub.s32 3, %v378_v59 }
  0x75   :  { %489 = vmatprep.subr.msk.bf16.mxu1 %vm198_vm0, %v488_v17  ;;  %s714_s8 = smov [#allocation13]  }
  0x76   :  { %v386_v1 = vrot.slane %v376_v61, %v385_v62  ;;  %v392_v3 = vrot.slane %v376_v61, %v391_v63  ;;  %v398_v6 = vrot.slane %v376_v61, %v397_v2 }
  0x77   :  { %481 = vmatmul.mubr.msk.bf16.vlgmr.msra.gmra.mrb[0].mxu1 %vm194_vm2, %v175_v16  ;;  %279 = vmatpush1.bf16.msra.mxu0 %v521_v19 }
  0x78   :  { %336 = vmatpush1.bf16.msra.mxu1 %v330_v21  ;;  %367 = vmatprep.mubr.bf16.mxu1 %v710_v0  ;;  %v380_v0 = vrot.slane %v376_v61, %v379_v60 }
  0x7a   :  { %486 = vmatmul.mubr.msk.bf16.vlgmr.msra.gmra.mrb[4].mxu0 %vm272_vm3, %v247_v22 }
  0x7f   :  { %490 = vmatmul.mubr.msk.bf16.vlgmr.msra.gmra.mrb[4].mxu1 %vm325_vm4, %v318_v24 }
 0x145   :  { %v167_v25 = vpop.f32.mrb[0].mxu0 }
 0x146   :  { %v169_v26 = vpop.f32.mrb[1].mxu0  ;;  %v381_v4 = vadd.f32 %v380_v0, %v167_v25 }
 0x147   :  { %v171_v27 = vpop.f32.mrb[2].mxu0 }
 0x148   :  { %v172_v28 = vpop.f32.mrb[3].mxu0 }
 0x14a   :  { %v239_v29 = vpop.f32.mrb[0].mxu1 }
 0x14b   :  { %v241_v30 = vpop.f32.mrb[1].mxu1  ;;  %v387_v5 = vadd.f32 %v386_v1, %v239_v29 }
 0x14c   :  { %v401_v31 = vadd.f32 %v241_v30, %v169_v26  ;;  %v243_v32 = vpop.f32.mrb[2].mxu1 }
 0x14d   :  { %v244_v33 = vpop.f32.mrb[3].mxu1  ;;  %v310_v34 = vpop.f32.mrb[4].mxu0 }
 0x14e   :  { %v312_v35 = vpop.f32.mrb[5].mxu0  ;;  %v393_v7 = vadd.f32 %v392_v3, %v310_v34 }
 0x14f   :  { %v402_v36 = vadd.f32 %v401_v31, %v312_v35  ;;  %v314_v37 = vpop.f32.mrb[6].mxu0 }
 0x150   :  { %v315_v38 = vpop.f32.mrb[7].mxu0 }
 0x152   :  { %v369_v39 = vpop.f32.mrb[4].mxu1 }
 0x153   :  { %v371_v40 = vpop.f32.mrb[5].mxu1  ;;  %v399_v8 = vadd.f32 %v398_v6, %v369_v39 }
 0x154   :  { %v403_v42 = vadd.f32 %v402_v36, %v371_v40  ;;  %v373_v43 = vpop.f32.mrb[6].mxu1 }
 0x155   :  { %v374_v44 = vpop.f32.mrb[7].mxu1 }
 0x156   :  { %v411_v45 = vadd.f32 %v491_v41, %v403_v42 }
 0x158   :  { %v413_v46 = vsel %vm412_vm5, %v411_v45, -inf }
 0x159   :  { %414 = vmax.xlane.f32.xlu0 %v413_v46 }
 0x1e6   :  { %v415_v47 = vpop.xlane.xlu0 %414 }
 0x1e7   :  { %v416_v48 = vsub.f32 %v411_v45, %v415_v47 }
 0x1e9   :  { %v417_v49 = vmul.f32 1.442695, %v416_v48 }
 0x1eb   :  { %526 = vpow2.f32 %v417_v49 }
 0x1f5   :  { %v527_v50 = vpop.eup %526 }
 0x1f6   :  { %v419_v51 = vsel %vm412_vm5, %v527_v50, 0.0 }
 0x1f7   :  { %420 = vadd.xlane.f32.xlu0 %v419_v51 }
 0x284   :  { %v421_v53 = vpop.xlane.xlu0 %420 }
 0x285   :  { %528 = vrcp.f32 %v421_v53 }
 0x286   :  { %530 = vtanh.f32 %v381_v4 }
 0x287   :  { %532 = vtanh.f32 %v387_v5 }
 0x288   :  { %534 = vtanh.f32 %v393_v7 }
 0x289   :  { %536 = vtanh.f32 %v399_v8 }
 0x28f   :  { %v529_v54 = vpop.eup %528 }
 0x290   :  { %v423_v55 = vmul.f32 %v529_v54, %v527_v50  ;;  %v531_v10 = vpop.eup %530 }
 0x291   :  { %v533_v11 = vpop.eup %532 }
 0x292   :  { %450 = vst.msk [vmem:[%s915_s11] sm:$0xff] %vm412_vm5, %v423_v55  ;;  %437 = vperm.xlu0 %507, %v423_v55   ;;  %426 = vperm.xlu1 %505, %v423_v55   ;;  %v535_v16 = vpop.eup %534  ;;  %s457_s11 = sshll.u32 %s714_s8, 4  ;;  %s458_s11 = int_to_ptr.vmem [resolvable:$true] %s457_s11 }
 0x293   :  { %v537_v19 = vpop.eup %536  ;;  %s670_s4 = scalar_lea.vmem %s458_s11, 64  ;;  %p675_p7 = scmp.lt.s32.totalorder %s458_s11, %s458_s11 }
 0x294   :  { %p671_p6 = scmp.ne.s32.totalorder %s458_s11, %s670_s4  ;;  %p676_p8 = scmp.lt.s32.totalorder %s670_s4, %s670_s4 }
 0x296   :  { %506 = vset.pattern.permute.xlu1 %v712_v56  ;;  %509 = vset.pattern.permute.xlu0 %v713_v57  ;;  %p677_p9 = por %p676_p8, %p675_p7 }
 0x297   :  { %431 = vperm.xlu1 %506, %v423_v55  }
 0x298   :  { %p678_p10 = pnand %p677_p9, %p671_p6 }
 0x29b   :  { %508 = vset.pattern.permute.xlu1 %v713_v57 }
 0x29c   :  { %443 = vperm.xlu1 %508, %v423_v55  }
 0x311   :  { %v427_v9 = vpop.permute.xlu1 %426  ;;  %v438_v12 = vpop.permute.xlu0 %437 }
 0x312   :  { %v429_v14 = vmul.f32 %v531_v10, %v427_v9  ;;  %v440_v17 = vmul.f32 %v535_v16, %v438_v12 }
 0x316   :  { %v432_v13 = vpop.permute.xlu1 %431 }
 0x317   :  { %v434_v15 = vmul.f32 %v533_v11, %v432_v13 }
 0x319   :  { %v435_v18 = vadd.f32 %v434_v15, %v429_v14 }
 0x31b   :  { %v441_v20 = vadd.f32 %v440_v17, %v435_v18  ;;  %v444_v21 = vpop.permute.xlu1 %443 }
 0x31c   :  { %v446_v22 = vmul.f32 %v537_v19, %v444_v21 }
 0x31e   :  { %v447_v23 = vadd.f32 %v446_v22, %v441_v20 }
 0x320   :  { %v448_v24 = vpack.c.bf16 %v447_v23, %v447_v23 }
 0x322   :  { %449 = vst [vmem:[#allocation13] sm:$0xf] %v448_v24 }
 0x323   :  { %681 = shalt.err (!%p678_p10)
}
 0x324   :  { %s682_s17 = scalar_lea.hbm %s914_s10, 64 }
 0x325   :  { %p683_p11 = scmp.ne.s32.totalorder %s914_s10, %s682_s17  ;;  %p686_p12 = scmp.lt.u32.totalorder %s682_s17, %s914_s10 }
 0x327   :  { %p688_p13 = pnand %p686_p12, %p683_p11 }
 0x329   :  { %691 = shalt.err (!%p688_p13)
}
 0x32a   :  { %460 = dma.vmem_to_hbm [thread:$0]  %s458_s11, 64, %s914_s10, [#allocation4]  }
 0x32b   :  { %700 = dma.done.wait [#allocation4], 64  }
 0x32c   :  { %701 = vsyncadd [#allocation4], 4294967232 }
 0x32d   :  { %468 = vsyncpa [#allocation3], 1 }
 0x32e   :  { %469 = vsyncpa [#allocation6], 1 }
 0x32f   :  { %470 = vsyncpa [#allocation9], 1 }
 0x330   :  { %471 = vsyncpa [#allocation12], 1 }
 0x331   :  { %472 = vsyncpa [#allocation4], 1 }

// kernel: tpu_custom_call.1
= control target key start
LH: loop header
LB: loop body
LE: loop exit
PB: predicated region body
PF: predicated region fallthrough
CT: control target
= control target key end

     0   :  { %17 = vsyncpa [#allocation3], 0  ;;  %s904_s0 = inlined_call_operand.hbm [shape: f32[8,16], index: 0, kind: input, shape index: {}]   ;;  %s905_s1 = inlined_call_operand.hbm [shape: f32[8,24], index: 1, kind: input, shape index: {}]   ;;  %s906_s2 = inlined_call_operand.hbm [shape: f32[8,32], index: 2, kind: input, shape index: {}]   ;;  %s907_s3 = inlined_call_operand.vmem [shape: f32[8,8], index: 3, kind: input, shape index: {}]   ;;  %s908_s4 = inlined_call_operand.hbm [shape: bf16[16,256], index: 4, kind: input, shape index: {}]   ;;  %s909_s5 = inlined_call_operand.hbm [shape: bf16[24,256], index: 5, kind: input, shape index: {}]   ;;  %s910_s6 = inlined_call_operand.hbm [shape: bf16[32,256], index: 6, kind: input, shape index: {}]   ;;  %s911_s7 = inlined_call_operand.vmem [shape: bf16[8,256], index: 7, kind: input, shape index: {}]   ;;  %s912_s8 = inlined_call_operand.vmem [shape: f32[4,128], index: 8, kind: input, shape index: {}]   ;;  %s913_s9 = inlined_call_operand.vmem [shape: f32[1,4], index: 9, kind: input, shape index: {}]   ;;  %s914_s10 = inlined_call_operand.hbm [shape: bf16[8,128], index: 10, kind: output, shape index: {0}]   ;;  %s915_s11 = inlined_call_operand.vmem [shape: f32[8,4], index: 11, kind: output, shape index: {1}]  }
   0x1   :  { %18 = vsyncpa [#allocation6], 0 }
   0x2   :  { %19 = vsyncpa [#allocation9], 0 }
   0x3   :  { %20 = vsyncpa [#allocation12], 0 }
   0x4   :  { %21 = vsyncpa [#allocation4], 0  ;;  %s702_s17 = smov [#allocation5]   ;;  %s703_s19 = smov [#allocation8]  }
   0x5   :  { %s38_s18 = sshll.u32 %s702_s17, 4  ;;  %s59_s20 = sshll.u32 %s703_s19, 4  ;;  %s39_s18 = int_to_ptr.vmem [resolvable:$true] %s38_s18  ;;  %s775_s20 = int_to_ptr.vmem [resolvable:$true] %s59_s20 }
   0x6   :  { %s538_s23 = scalar_lea.hbm %s905_s1, 128 }
   0x7   :  { %p539_p0 = scmp.ne.s32.totalorder %s905_s1, %s538_s23  ;;  %p542_p1 = scmp.lt.u32.totalorder %s538_s23, %s905_s1 }
   0x9   :  { %p544_p2 = pnand %p542_p1, %p539_p0 }
   0xb   :  { %547 = shalt.err (!%p544_p2)
}
   0xc   :  { %s548_s28 = scalar_lea.vmem %s39_s18, 128  ;;  %p553_p4 = scmp.lt.s32.totalorder %s39_s18, %s39_s18 }
   0xd   :  { %p549_p3 = scmp.ne.s32.totalorder %s39_s18, %s548_s28  ;;  %p554_p5 = scmp.lt.s32.totalorder %s548_s28, %s548_s28 }
   0xf   :  { %p555_p6 = por %p554_p5, %p553_p4 }
  0x11   :  { %p556_p7 = pnand %p555_p6, %p549_p3 }
  0x13   :  { %559 = shalt.err (!%p556_p7)
}
  0x14   :  { %41 = dma.hbm_to_vmem [thread:$0]  %s905_s1, 128, %s39_s18, [#allocation6]  }
  0x15   :  { %s560_s14 = scalar_lea.hbm %s908_s4, 256 }
  0x16   :  { %p561_p8 = scmp.ne.s32.totalorder %s908_s4, %s560_s14  ;;  %p564_p9 = scmp.lt.u32.totalorder %s560_s14, %s908_s4 }
  0x18   :  { %p566_p10 = pnand %p564_p9, %p561_p8 }
  0x1a   :  { %569 = shalt.err (!%p566_p10)
}
  0x1b   :  { %s570_s21 = scalar_lea.vmem %s775_s20, 256  ;;  %p575_p12 = scmp.lt.s32.totalorder %s775_s20, %s775_s20 }
  0x1c   :  { %p571_p11 = scmp.ne.s32.totalorder %s775_s20, %s570_s21  ;;  %p576_p13 = scmp.lt.s32.totalorder %s570_s21, %s570_s21 }
  0x1e   :  { %p577_p0 = por %p576_p13, %p575_p12 }
  0x20   :  { %p578_p1 = pnand %p577_p0, %p571_p11 }
  0x22   :  { %581 = shalt.err (!%p578_p1)
}
  0x23   :  { %s704_s1 = smov 128   ;;  %s705_s18 = smov 8  }
  0x24   :  { %65 = dma.hbm_to_vmem [thread:$0]  %s908_s4, 256, %s775_s20, [#allocation9], %s704_s1, %s704_s1, %s705_s18  }
  0x25   :  { %s706_s24 = smov [#allocation2]   ;;  %s707_s26 = smov [#allocation7]  }
  0x26   :  { %s28_s25 = sshll.u32 %s706_s24, 4  ;;  %s48_s27 = sshll.u32 %s707_s26, 4  ;;  %s29_s25 = int_to_ptr.vmem [resolvable:$true] %s28_s25  ;;  %s49_s27 = int_to_ptr.vmem [resolvable:$true] %s48_s27 }
  0x27   :  { %s582_s30 = scalar_lea.hbm %s904_s0, 128 }
  0x28   :  { %p583_p2 = scmp.ne.s32.totalorder %s904_s0, %s582_s30  ;;  %p586_p3 = scmp.lt.u32.totalorder %s582_s30, %s904_s0 }
  0x2a   :  { %p588_p4 = pnand %p586_p3, %p583_p2 }
  0x2c   :  { %591 = shalt.err (!%p588_p4)
}
  0x2d   :  { %s592_s4 = scalar_lea.vmem %s29_s25, 128  ;;  %p597_p6 = scmp.lt.s32.totalorder %s29_s25, %s29_s25 }
  0x2e   :  { %p593_p5 = scmp.ne.s32.totalorder %s29_s25, %s592_s4  ;;  %p598_p7 = scmp.lt.s32.totalorder %s592_s4, %s592_s4 }
  0x30   :  { %p599_p8 = por %p598_p7, %p597_p6 }
  0x32   :  { %p600_p9 = pnand %p599_p8, %p593_p5 }
  0x34   :  { %603 = shalt.err (!%p600_p9)
}
  0x35   :  { %31 = dma.hbm_to_vmem [thread:$0]  %s904_s0, 128, %s29_s25, [#allocation3]  }
  0x36   :  { %s604_s21 = scalar_lea.hbm %s906_s2, 128 }
  0x37   :  { %p605_p10 = scmp.ne.s32.totalorder %s906_s2, %s604_s21  ;;  %p608_p11 = scmp.lt.u32.totalorder %s604_s21, %s906_s2 }
  0x39   :  { %p610_p12 = pnand %p608_p11, %p605_p10 }
  0x3b   :  { %613 = shalt.err (!%p610_p12)
}
  0x3c   :  { %s614_s28 = scalar_lea.vmem %s49_s27, 128  ;;  %p619_p0 = scmp.lt.s32.totalorder %s49_s27, %s49_s27 }
  0x3d   :  { %p615_p13 = scmp.ne.s32.totalorder %s49_s27, %s614_s28  ;;  %p620_p1 = scmp.lt.s32.totalorder %s614_s28, %s614_s28 }
  0x3f   :  { %p621_p2 = por %p620_p1, %p619_p0 }
  0x41   :  { %p622_p3 = pnand %p621_p2, %p615_p13 }
  0x43   :  { %625 = shalt.err (!%p622_p3)
}
  0x44   :  { %51 = dma.hbm_to_vmem [thread:$0]  %s906_s2, 128, %s49_s27, [#allocation6]  }
  0x45   :  { %s708_s29 = smov [#allocation10]   ;;  %s709_s12 = smov [#allocation11]  }
  0x46   :  { %s71_s30 = sshll.u32 %s708_s29, 4  ;;  %s83_s13 = sshll.u32 %s709_s12, 4  ;;  %s72_s30 = int_to_ptr.vmem [resolvable:$true] %s71_s30  ;;  %s833_s13 = int_to_ptr.vmem [resolvable:$true] %s83_s13 }
  0x47   :  { %s626_s4 = scalar_lea.hbm %s909_s5, 384 }
  0x48   :  { %p627_p4 = scmp.ne.s32.totalorder %s909_s5, %s626_s4  ;;  %p630_p5 = scmp.lt.u32.totalorder %s626_s4, %s909_s5 }
  0x4a   :  { %p632_p6 = pnand %p630_p5, %p627_p4 }
  0x4c   :  { %635 = shalt.err (!%p632_p6)
}
  0x4d   :  { %s636_s2 = scalar_lea.vmem %s72_s30, 384  ;;  %p641_p8 = scmp.lt.s32.totalorder %s72_s30, %s72_s30 }
  0x4e   :  { %p637_p7 = scmp.ne.s32.totalorder %s72_s30, %s636_s2  ;;  %p642_p9 = scmp.lt.s32.totalorder %s636_s2, %s636_s2 }
  0x50   :  { %p643_p10 = por %p642_p9, %p641_p8 }
  0x52   :  { %p644_p11 = pnand %p643_p10, %p637_p7 }
  0x54   :  { %647 = shalt.err (!%p644_p11)
}
  0x55   :  { %77 = dma.hbm_to_vmem [thread:$0]  %s909_s5, 384, %s72_s30, [#allocation9], %s704_s1, %s704_s1, %s705_s18  }
  0x56   :  { %s648_s24 = scalar_lea.hbm %s910_s6, 512 }
  0x57   :  { %p649_p12 = scmp.ne.s32.totalorder %s910_s6, %s648_s24  ;;  %p652_p13 = scmp.lt.u32.totalorder %s648_s24, %s910_s6 }
  0x59   :  { %p654_p0 = pnand %p652_p13, %p649_p12 }
  0x5b   :  { %657 = shalt.err (!%p654_p0)
}
  0x5c   :  { %s658_s29 = scalar_lea.vmem %s833_s13, 512  ;;  %p663_p2 = scmp.lt.s32.totalorder %s833_s13, %s833_s13 }
  0x5d   :  { %p659_p1 = scmp.ne.s32.totalorder %s833_s13, %s658_s29  ;;  %p664_p3 = scmp.lt.s32.totalorder %s658_s29, %s658_s29 }
  0x5f   :  { %p665_p4 = por %p664_p3, %p663_p2 }
  0x61   :  { %p666_p5 = pnand %p665_p4, %p659_p1 }
  0x63   :  { %669 = shalt.err (!%p666_p5)
}
  0x64   :  { %89 = dma.hbm_to_vmem [thread:$0]  %s910_s6, 512, %s833_s13, [#allocation12], %s704_s1, %s704_s1, %s705_s18  }
  0x65   :  { %692 = dma.done.wait [#allocation3], 128  }
  0x66   :  { %693 = vsyncadd [#allocation3], 4294967168 }
  0x67   :  { %694 = dma.done.wait [#allocation6], 256  }
  0x68   :  { %695 = vsyncadd [#allocation6], 4294967040 }
  0x69   :  { %696 = dma.done.wait [#allocation9], 640  }
  0x6a   :  { %697 = vsyncadd [#allocation9], 4294966656 }
  0x6b   :  { %698 = dma.done.wait [#allocation12], 512  }
  0x6c   :  { %699 = vsyncadd [#allocation12], 4294966784  ;;  %v710_v0 = vmov 0   ;;  %v510_v1 = vld [vmem:[#allocation8 + $0x4] ss:$8 sps:$4 sm:$0xff]   ;;  %vm198_vm0 = vcmask 1043456   ;;  %v377_v58 = vlaneseq }
  0x6d   :  { %165 = vmatprep.mubr.bf16.mxu0 %v710_v0  ;;  %237 = vmatprep.mubr.bf16.mxu1 %v710_v0  ;;  %v512_v2 = vld [vmem:[#allocation10 + $0x4] ss:$8 sps:$4 sm:$0xff]   ;;  %v514_v3 = vld [vmem:[#allocation8] ss:$8 sps:$4 sm:$0xff]   ;;  %v515_v4 = vld [vmem:[#allocation10] ss:$8 sps:$4 sm:$0xff]  }
  0x6e   :  { %505 = vset.pattern.permute.xlu1 %v710_v0  ;;  %133 = vmatprep.subr.bf16.mxu0 %v510_v1  ;;  %v115_v5 = vld [vmem:[#allocation2] sm:$0xff]  ;;  %v178_v7 = vld [vmem:[#allocation10 + $0x10] sm:$0xff]  ;;  %vm129_vm1 = vcmask 130048   ;;  %v174_v12 = vld [vmem:[#allocation5] sm:$0xff]  ;;  %vm194_vm2 = vcmask 195584   ;;  %vm272_vm3 = vcmask 261120  }
  0x6f   :  { %205 = vmatprep.subr.bf16.mxu1 %v512_v2  ;;  %v116_v6 = vpack.c.bf16 %v115_v5, %v115_v5  ;;  %134 = vmatpush1.bf16.msra.mxu0 %v514_v3  ;;  %v479_v8 = vcombine.high %v178_v7, %v178_v7  ;;  %v517_v9 = vld [vmem:[#allocation11] ss:$8 sps:$4 sm:$0xff]   ;;  %v519_v10 = vld [vmem:[#allocation11 + $0x4] ss:$8 sps:$4 sm:$0xff]   ;;  %v478_v11 = vcombine.low %v178_v7, %v178_v7  ;;  %v523_v14 = vld [vmem:[#allocation11 + $0x14] ss:$8 sps:$4 sm:$0xff]  }
  0x70   :  { %206 = vmatpush1.bf16.msra.mxu1 %v515_v4  ;;  %276 = vmatprep.subr.bf16.mxu0 %v519_v10  ;;  %v319_v15 = vld [vmem:[%s911_s7] sm:$0xff]  ;;  %v175_v16 = vpack.c.bf16 %v174_v12, %v174_v12  ;;  %v246_v20 = vld [vmem:[#allocation7] sm:$0xff]  ;;  %vm325_vm4 = vcmask 64512   ;;  %vm412_vm5 = vcmask 31744   ;;  %v711_v52 = vmov 2  }
  0x71   :  { %480 = vmatprep.subr.msk.bf16.mxu1 %vm198_vm0, %v479_v8  ;;  %v200_v13 = vsel %vm198_vm0, %v478_v11, 0  ;;  %v488_v17 = vcombine.high %v319_v15, %v319_v15  ;;  %v487_v18 = vcombine.low %v319_v15, %v319_v15  ;;  %v521_v19 = vld [vmem:[#allocation11 + $0x10] ss:$8 sps:$4 sm:$0xff]   ;;  %v247_v22 = vpack.c.bf16 %v246_v20, %v246_v20  ;;  %507 = vset.pattern.permute.xlu0 %v711_v52 }
  0x72   :  { %475 = vmatmul.mubr.msk.bf16.vlgmr.msra.gmra.mrb[0].mxu0 %vm129_vm1, %v116_v6  ;;  %v317_v23 = vld [vmem:[%s907_s3] sm:$0xff]  ;;  %v712_v56 = vmov 1   ;;  %v713_v57 = vmov 3   ;;  %v378_v59 = vshrl.u32 %v377_v58, 7 }
  0x73   :  { %277 = vmatpush1.bf16.msra.mxu0 %v517_v9  ;;  %v330_v21 = vsel %vm198_vm0, %v487_v18, 0  ;;  %308 = vmatprep.mubr.bf16.mxu0 %v710_v0  ;;  %v318_v24 = vpack.c.bf16 %v317_v23, %v317_v23  ;;  %v491_v41 = vld [vmem:[%s913_s9] ss:$0 sm:$0xff] }
  0x74   :  { %208 = vmatpush1.bf16.msra.mxu1 %v200_v13  ;;  %278 = vmatprep.subr.bf16.mxu0 %v523_v14  ;;  %v379_v60 = vsub.s32 0, %v378_v59  ;;  %v376_v61 = vld [vmem:[%s912_s8] sm:$0xf]  ;;  %v385_v62 = vsub.s32 1, %v378_v59  ;;  %v391_v63 = vsub.s32 2, %v378_v59  ;;  %v397_v2 = vsub.s32 3, %v378_v59 }
  0x75   :  { %489 = vmatprep.subr.msk.bf16.mxu1 %vm198_vm0, %v488_v17  ;;  %s714_s8 = smov [#allocation13]  }
  0x76   :  { %v386_v1 = vrot.slane %v376_v61, %v385_v62  ;;  %v392_v3 = vrot.slane %v376_v61, %v391_v63  ;;  %v398_v6 = vrot.slane %v376_v61, %v397_v2 }
  0x77   :  { %481 = vmatmul.mubr.msk.bf16.vlgmr.msra.gmra.mrb[0].mxu1 %vm194_vm2, %v175_v16  ;;  %279 = vmatpush1.bf16.msra.mxu0 %v521_v19 }
  0x78   :  { %336 = vmatpush1.bf16.msra.mxu1 %v330_v21  ;;  %367 = vmatprep.mubr.bf16.mxu1 %v710_v0  ;;  %v380_v0 = vrot.slane %v376_v61, %v379_v60 }
  0x7a   :  { %486 = vmatmul.mubr.msk.bf16.vlgmr.msra.gmra.mrb[4].mxu0 %vm272_vm3, %v247_v22 }
  0x7f   :  { %490 = vmatmul.mubr.msk.bf16.vlgmr.msra.gmra.mrb[4].mxu1 %vm325_vm4, %v318_v24 }
 0x145   :  { %v167_v25 = vpop.f32.mrb[0].mxu0 }
 0x146   :  { %v169_v26 = vpop.f32.mrb[1].mxu0  ;;  %v381_v4 = vadd.f32 %v380_v0, %v167_v25 }
 0x147   :  { %v171_v27 = vpop.f32.mrb[2].mxu0 }
 0x148   :  { %v172_v28 = vpop.f32.mrb[3].mxu0 }
 0x14a   :  { %v239_v29 = vpop.f32.mrb[0].mxu1 }
 0x14b   :  { %v241_v30 = vpop.f32.mrb[1].mxu1  ;;  %v387_v5 = vadd.f32 %v386_v1, %v239_v29 }
 0x14c   :  { %v401_v31 = vadd.f32 %v241_v30, %v169_v26  ;;  %v243_v32 = vpop.f32.mrb[2].mxu1 }
 0x14d   :  { %v244_v33 = vpop.f32.mrb[3].mxu1  ;;  %v310_v34 = vpop.f32.mrb[4].mxu0 }
 0x14e   :  { %v312_v35 = vpop.f32.mrb[5].mxu0  ;;  %v393_v7 = vadd.f32 %v392_v3, %v310_v34 }
 0x14f   :  { %v402_v36 = vadd.f32 %v401_v31, %v312_v35  ;;  %v314_v37 = vpop.f32.mrb[6].mxu0 }
 0x150   :  { %v315_v38 = vpop.f32.mrb[7].mxu0 }
 0x152   :  { %v369_v39 = vpop.f32.mrb[4].mxu1 }
 0x153   :  { %v371_v40 = vpop.f32.mrb[5].mxu1  ;;  %v399_v8 = vadd.f32 %v398_v6, %v369_v39 }
 0x154   :  { %v403_v42 = vadd.f32 %v402_v36, %v371_v40  ;;  %v373_v43 = vpop.f32.mrb[6].mxu1 }
 0x155   :  { %v374_v44 = vpop.f32.mrb[7].mxu1 }
 0x156   :  { %v411_v45 = vadd.f32 %v491_v41, %v403_v42 }
 0x158   :  { %v413_v46 = vsel %vm412_vm5, %v411_v45, -inf }
 0x159   :  { %414 = vmax.xlane.f32.xlu0 %v413_v46 }
 0x1e6   :  { %v415_v47 = vpop.xlane.xlu0 %414 }
 0x1e7   :  { %v416_v48 = vsub.f32 %v411_v45, %v415_v47 }
 0x1e9   :  { %v417_v49 = vmul.f32 1.442695, %v416_v48 }
 0x1eb   :  { %526 = vpow2.f32 %v417_v49 }
 0x1f5   :  { %v527_v50 = vpop.eup %526 }
 0x1f6   :  { %v419_v51 = vsel %vm412_vm5, %v527_v50, 0.0 }
 0x1f7   :  { %420 = vadd.xlane.f32.xlu0 %v419_v51 }
 0x284   :  { %v421_v53 = vpop.xlane.xlu0 %420 }
 0x285   :  { %528 = vrcp.f32 %v421_v53 }
 0x286   :  { %530 = vtanh.f32 %v381_v4 }
 0x287   :  { %532 = vtanh.f32 %v387_v5 }
 0x288   :  { %534 = vtanh.f32 %v393_v7 }
 0x289   :  { %536 = vtanh.f32 %v399_v8 }
 0x28f   :  { %v529_v54 = vpop.eup %528 }
 0x290   :  { %v423_v55 = vmul.f32 %v529_v54, %v527_v50  ;;  %v531_v10 = vpop.eup %530 }
 0x291   :  { %v533_v11 = vpop.eup %532 }
 0x292   :  { %450 = vst.msk [vmem:[%s915_s11] sm:$0xff] %vm412_vm5, %v423_v55  ;;  %437 = vperm.xlu0 %507, %v423_v55   ;;  %426 = vperm.xlu1 %505, %v423_v55   ;;  %v535_v16 = vpop.eup %534  ;;  %s457_s11 = sshll.u32 %s714_s8, 4  ;;  %s458_s11 = int_to_ptr.vmem [resolvable:$true] %s457_s11 }
 0x293   :  { %v537_v19 = vpop.eup %536  ;;  %s670_s4 = scalar_lea.vmem %s458_s11, 64  ;;  %p675_p7 = scmp.lt.s32.totalorder %s458_s11, %s458_s11 }
 0x294   :  { %p671_p6 = scmp.ne.s32.totalorder %s458_s11, %s670_s4  ;;  %p676_p8 = scmp.lt.s32.totalorder %s670_s4, %s670_s4 }
 0x296   :  { %506 = vset.pattern.permute.xlu1 %v712_v56  ;;  %509 = vset.pattern.permute.xlu0 %v713_v57  ;;  %p677_p9 = por %p676_p8, %p675_p7 }
 0x297   :  { %431 = vperm.xlu1 %506, %v423_v55  }
 0x298   :  { %p678_p10 = pnand %p677_p9, %p671_p6 }
 0x29b   :  { %508 = vset.pattern.permute.xlu1 %v713_v57 }
 0x29c   :  { %443 = vperm.xlu1 %508, %v423_v55  }
 0x311   :  { %v427_v9 = vpop.permute.xlu1 %426  ;;  %v438_v12 = vpop.permute.xlu0 %437 }
 0x312   :  { %v429_v14 = vmul.f32 %v531_v10, %v427_v9  ;;  %v440_v17 = vmul.f32 %v535_v16, %v438_v12 }
 0x316   :  { %v432_v13 = vpop.permute.xlu1 %431 }
 0x317   :  { %v434_v15 = vmul.f32 %v533_v11, %v432_v13 }
 0x319   :  { %v435_v18 = vadd.f32 %v434_v15, %v429_v14 }
 0x31b   :  { %v441_v20 = vadd.f32 %v440_v17, %v435_v18  ;;  %v444_v21 = vpop.permute.xlu1 %443 }
 0x31c   :  { %v446_v22 = vmul.f32 %v537_v19, %v444_v21 }
 0x31e   :  { %v447_v23 = vadd.f32 %v446_v22, %v441_v20 }
 0x320   :  { %v448_v24 = vpack.c.bf16 %v447_v23, %v447_v23 }
 0x322   :  { %449 = vst [vmem:[#allocation13] sm:$0xf] %v448_v24 }
 0x323   :  { %681 = shalt.err (!%p678_p10)
}
 0x324   :  { %s682_s17 = scalar_lea.hbm %s914_s10, 64 }
 0x325   :  { %p683_p11 = scmp.ne.s32.totalorder %s914_s10, %s682_s17  ;;  %p686_p12 = scmp.lt.u32.totalorder %s682_s17, %s914_s10 }
 0x327   :  { %p688_p13 = pnand %p686_p12, %p683_p11 }
 0x329   :  { %691 = shalt.err (!%p688_p13)
}
 0x32a   :  { %460 = dma.vmem_to_hbm [thread:$0]  %s458_s11, 64, %s914_s10, [#allocation4]  }
 0x32b   :  { %700 = dma.done.wait [#allocation4], 64  }
 0x32c   :  { %701 = vsyncadd [#allocation4], 4294967232 }
 0x32d   :  { %468 = vsyncpa [#allocation3], 1 }
 0x32e   :  { %469 = vsyncpa [#allocation6], 1 }
 0x32f   :  { %470 = vsyncpa [#allocation9], 1 }
 0x330   :  { %471 = vsyncpa [#allocation12], 1 }
 0x331   :  { %472 = vsyncpa [#allocation4], 1 }

</bundles_post_ra>
